<compile_context>
chip_gen: v7x
topology: tpu7x:2x2x1
jax: 0.10.0
libtpu: 0.0.40
codegen_flags: <defaults>
</compile_context>

<pallas_src>
import jax
import jax.numpy as jnp
import numpy as np
from jax.experimental import pallas as pl
from jax.experimental.pallas import tpu as pltpu


def _round_up(x, m):
    return (x + m - 1) // m * m


def decoder_kernel(x_ref, w1_ref, b1_ref, w2_ref, b2_ref, o_ref):
    x = x_ref[...]                                   # (TB, latent) f32
    latent = x_ref.shape[1]

    # fc1 on the VPU: latent_dim is tiny, so the K-deep contraction is just a few
    # broadcast multiplies + adds (avoids MXU push/drain latency per tile).
    h = x[:, 0:1] * w1_ref[0:1, :]                   # (TB, 1) * (1, H) -> (TB, H)
    for k in range(1, latent):                       # static unroll (latent is tiny)
        h = h + x[:, k:k + 1] * w1_ref[k:k + 1, :]
    h = h + b1_ref[...]                              # (1, H) broadcasts over batch
    h = jnp.maximum(h, 0.0)

    # fc_output on the MXU (K = hidden = 64); keep h in f32 for accumulation.
    y = jnp.dot(h, w2_ref[...], preferred_element_type=jnp.float32)
    y = y + b2_ref[...]                              # (1, out_dim)
    o_ref[...] = jax.nn.sigmoid(y).astype(o_ref.dtype)


def decoder_forward(x, w1, b1, w2, b2, *, tile_b=4096):
    """x: (B, latent_dim) f32 -> (B, output_dim) f32.

    Weights stored as (in_features, out_features); biases as (1, out_features).
    """
    B, latent = x.shape
    hidden = w1.shape[1]
    out_dim = w2.shape[1]

    # Batch tiling: pad B only to a multiple of 8, then derive the tile size from
    # the desired number of grid steps so padding waste is <= 8 rows per step.
    # Force >= 2 steps when there is enough work so v7x megacore can shard the
    # "parallel" axis across its two TensorCores.
    B8 = _round_up(B, 8)
    nsteps = max(pl.cdiv(B8, tile_b), 2 if B8 >= 16 else 1)
    tb = _round_up(pl.cdiv(B8, nsteps), 8)
    Bp = nsteps * tb
    xp = jnp.pad(x, ((0, Bp - B), (0, 0))) if Bp != B else x

    out = pl.pallas_call(
        decoder_kernel,
        out_shape=jax.ShapeDtypeStruct((Bp, out_dim), jnp.float32),
        grid=(nsteps,),
        in_specs=[
            pl.BlockSpec((tb, latent), lambda i: (i, 0)),       # x tile: streamed
            pl.BlockSpec((latent, hidden), lambda i: (0, 0)),   # w1: VMEM-resident
            pl.BlockSpec((1, hidden), lambda i: (0, 0)),        # b1: VMEM-resident
            pl.BlockSpec((hidden, out_dim), lambda i: (0, 0)),  # w2: VMEM-resident
            pl.BlockSpec((1, out_dim), lambda i: (0, 0)),       # b2: VMEM-resident
        ],
        out_specs=pl.BlockSpec((tb, out_dim), lambda i: (i, 0)),
        compiler_params=pltpu.CompilerParams(
            dimension_semantics=("parallel",),
            vmem_limit_bytes=32 << 20,   # headroom for larger tile_b sweeps (v5e: 16 MiB default)
        ),
    )(xp, w1, b1, w2, b2)

    # Only the padded batch rows need slicing off; no padded columns exist.
    return out[:B] if Bp != B else out


def init_decoder_params(key, latent_dim, hidden_dim, output_dim):
    """Deterministic init mimicking PyTorch nn.Linear default (uniform +-1/sqrt(fan_in)).
    Weights are stored as (in_features, out_features)."""
    k1, k2, k3, k4 = jax.random.split(key, 4)
    bound1 = 1.0 / np.sqrt(latent_dim)
    bound2 = 1.0 / np.sqrt(hidden_dim)
    w1 = jax.random.uniform(k1, (latent_dim, hidden_dim), jnp.float32, -bound1, bound1)
    b1 = jax.random.uniform(k2, (1, hidden_dim), jnp.float32, -bound1, bound1)
    w2 = jax.random.uniform(k3, (hidden_dim, output_dim), jnp.float32, -bound2, bound2)
    b2 = jax.random.uniform(k4, (1, output_dim), jnp.float32, -bound2, bound2)
    return w1, b1, w2, b2


def _ref(x, w1, b1, w2, b2):
    return jax.nn.sigmoid(jnp.maximum(x @ w1 + b1, 0.0) @ w2 + b2)


if __name__ == "__main__":
    latent_dim = 2
    hidden_dim = 64
    output_dim = 32

    key = jax.random.PRNGKey(0)
    kx, kp, kx2 = jax.random.split(key, 3)
    w1, b1, w2, b2 = init_decoder_params(kp, latent_dim, hidden_dim, output_dim)

    # Small-shape check (single grid step, no padding).
    x = jax.random.normal(kx, (8, latent_dim), jnp.float32)
    out = jax.block_until_ready(decoder_forward(x, w1, b1, w2, b2))
    np.testing.assert_allclose(
        np.asarray(out), np.asarray(_ref(x, w1, b1, w2, b2)), rtol=1e-5, atol=1e-5
    )

    # Multi-step grid + batch-padding check (520 rows -> 2 steps of 264, 8 pad rows).
    x2 = jax.random.normal(kx2, (520, latent_dim), jnp.float32)
    out2 = jax.block_until_ready(decoder_forward(x2, w1, b1, w2, b2))
    np.testing.assert_allclose(
        np.asarray(out2), np.asarray(_ref(x2, w1, b1, w2, b2)), rtol=1e-5, atol=1e-5
    )

    print("KERNEL_OK")
</pallas_src>

<mosaic_0001>
module attributes {stable_mosaic.version = 11 : i64} {
  func.func @decoder_kernel(%arg0: i32, %arg1: memref<8x2xf32, #tpu.memory_space<vmem>>, %arg2: memref<2x64xf32, #tpu.memory_space<vmem>>, %arg3: memref<1x64xf32, #tpu.memory_space<vmem>>, %arg4: memref<64x32xf32, #tpu.memory_space<vmem>>, %arg5: memref<1x32xf32, #tpu.memory_space<vmem>>, %arg6: memref<8x32xf32, #tpu.memory_space<vmem>>) attributes {dimension_semantics = [#tpu.dimension_semantics<parallel>], iteration_bounds = array<i64: 1>, scalar_prefetch = 0 : i64, scratch_operands = 0 : i64, tpu.core_type = #tpu.core_type<tc>, window_params = [{transform_indices = @transform_0, window_bounds = array<i64: 8, 2>}, {pipeline_mode = #tpu.pipeline_mode<synchronous>, transform_indices = @transform_1, window_bounds = array<i64: 2, 64>}, {pipeline_mode = #tpu.pipeline_mode<synchronous>, transform_indices = @transform_2, window_bounds = array<i64: 1, 64>}, {pipeline_mode = #tpu.pipeline_mode<synchronous>, transform_indices = @transform_3, window_bounds = array<i64: 64, 32>}, {pipeline_mode = #tpu.pipeline_mode<synchronous>, transform_indices = @transform_4, window_bounds = array<i64: 1, 32>}, {transform_indices = @transform_5, window_bounds = array<i64: 8, 32>}]} {
    %c0 = arith.constant 0 : index
    %c0_0 = arith.constant 0 : index
    %0 = vector.load %arg1[%c0, %c0_0] : memref<8x2xf32, #tpu.memory_space<vmem>>, vector<8x2xf32>
    %1 = vector.extract_strided_slice %0 {offsets = [0, 0], sizes = [8, 1], strides = [1, 1]} : vector<8x2xf32> to vector<8x1xf32>
    %c0_1 = arith.constant 0 : index
    %c0_2 = arith.constant 0 : index
    %2 = vector.load %arg2[%c0_1, %c0_2] : memref<2x64xf32, #tpu.memory_space<vmem>>, vector<1x64xf32>
    %3 = vector.broadcast %1 : vector<8x1xf32> to vector<8x64xf32>
    %4 = vector.broadcast %2 : vector<1x64xf32> to vector<8x64xf32>
    %5 = arith.mulf %3, %4 : vector<8x64xf32>
    %6 = vector.extract_strided_slice %0 {offsets = [0, 1], sizes = [8, 1], strides = [1, 1]} : vector<8x2xf32> to vector<8x1xf32>
    %c1 = arith.constant 1 : index
    %c0_3 = arith.constant 0 : index
    %7 = vector.load %arg2[%c1, %c0_3] : memref<2x64xf32, #tpu.memory_space<vmem>>, vector<1x64xf32>
    %8 = vector.broadcast %6 : vector<8x1xf32> to vector<8x64xf32>
    %9 = vector.broadcast %7 : vector<1x64xf32> to vector<8x64xf32>
    %10 = arith.mulf %8, %9 : vector<8x64xf32>
    %11 = arith.addf %5, %10 : vector<8x64xf32>
    %c0_4 = arith.constant 0 : index
    %c0_5 = arith.constant 0 : index
    %12 = vector.load %arg3[%c0_4, %c0_5] : memref<1x64xf32, #tpu.memory_space<vmem>>, vector<1x64xf32>
    %13 = vector.broadcast %12 : vector<1x64xf32> to vector<8x64xf32>
    %14 = arith.addf %11, %13 : vector<8x64xf32>
    %cst = arith.constant 0.000000e+00 : f32
    %15 = vector.broadcast %cst : f32 to vector<8x64xf32>
    %16 = arith.maximumf %14, %15 : vector<8x64xf32>
    %c0_6 = arith.constant 0 : index
    %c0_7 = arith.constant 0 : index
    %17 = vector.load %arg4[%c0_6, %c0_7] : memref<64x32xf32, #tpu.memory_space<vmem>>, vector<64x32xf32>
    %cst_8 = arith.constant dense<0.000000e+00> : vector<8x32xf32>
    %18 = tpu.matmul %16, %17, %cst_8 {dimension_numbers = #tpu.dot_dimension_numbers<[1], [0], [0], [1], [0, 0, 1, 1], [], []>} : vector<8x64xf32>, vector<64x32xf32>, vector<8x32xf32> -> vector<8x32xf32>
    %c0_9 = arith.constant 0 : index
    %c0_10 = arith.constant 0 : index
    %19 = vector.load %arg5[%c0_9, %c0_10] : memref<1x32xf32, #tpu.memory_space<vmem>>, vector<1x32xf32>
    %20 = vector.broadcast %19 : vector<1x32xf32> to vector<8x32xf32>
    %21 = arith.addf %18, %20 : vector<8x32xf32>
    %22 = arith.negf %21 : vector<8x32xf32>
    %23 = math.exp %22 : vector<8x32xf32>
    %cst_11 = arith.constant 1.000000e+00 : f32
    %24 = vector.broadcast %cst_11 : f32 to vector<8x32xf32>
    %25 = arith.addf %24, %23 : vector<8x32xf32>
    %26 = arith.divf %24, %25 : vector<8x32xf32>
    %c0_12 = arith.constant 0 : index
    %c0_13 = arith.constant 0 : index
    %27 = vector.load %arg6[%c0_12, %c0_13] : memref<8x32xf32, #tpu.memory_space<vmem>>, vector<8x32xf32>
    tpu.vector_store %arg6[%c0_12, %c0_13], %26 {strides = array<i32>} : memref<8x32xf32, #tpu.memory_space<vmem>>, vector<8x32xf32>,
    return
  }
  func.func @transform_0(%arg0: i32) -> (i32, i32) {
    %c0_i32 = arith.constant 0 : i32
    %c0_i32_0 = arith.constant 0 : i32
    return %arg0, %c0_i32 : i32, i32
  }
  func.func @transform_1(%arg0: i32) -> (i32, i32) {
    %c0_i32 = arith.constant 0 : i32
    %c0_i32_0 = arith.constant 0 : i32
    %c0_i32_1 = arith.constant 0 : i32
    return %c0_i32, %c0_i32_0 : i32, i32
  }
  func.func @transform_2(%arg0: i32) -> (i32, i32) {
    %c0_i32 = arith.constant 0 : i32
    %c0_i32_0 = arith.constant 0 : i32
    %c0_i32_1 = arith.constant 0 : i32
    return %c0_i32, %c0_i32_0 : i32, i32
  }
  func.func @transform_3(%arg0: i32) -> (i32, i32) {
    %c0_i32 = arith.constant 0 : i32
    %c0_i32_0 = arith.constant 0 : i32
    %c0_i32_1 = arith.constant 0 : i32
    return %c0_i32, %c0_i32_0 : i32, i32
  }
  func.func @transform_4(%arg0: i32) -> (i32, i32) {
    %c0_i32 = arith.constant 0 : i32
    %c0_i32_0 = arith.constant 0 : i32
    %c0_i32_1 = arith.constant 0 : i32
    return %c0_i32, %c0_i32_0 : i32, i32
  }
  func.func @transform_5(%arg0: i32) -> (i32, i32) {
    %c0_i32 = arith.constant 0 : i32
    %c0_i32_0 = arith.constant 0 : i32
    return %arg0, %c0_i32 : i32, i32
  }
}

</mosaic_0001>

<bundles_post_ra>
// kernel: tpu_custom_call.1
= control target key start
LH: loop header
LB: loop body
LE: loop exit
PB: predicated region body
PF: predicated region fallthrough
CT: control target
= control target key end

     0   :  { %v246_v3 = vmov 0   ;;  %v247_v4 = vmov 0.0|0.0   ;;  %s333_s0 = inlined_call_operand.vmem [shape: f32[8,2], index: 0, kind: input, shape index: {}]   ;;  %s334_s1 = inlined_call_operand.vmem [shape: f32[2,64], index: 1, kind: input, shape index: {}]   ;;  %s335_s2 = inlined_call_operand.vmem [shape: f32[1,64], index: 2, kind: input, shape index: {}]   ;;  %s336_s3 = inlined_call_operand.vmem [shape: f32[64,32], index: 3, kind: input, shape index: {}]   ;;  %s337_s4 = inlined_call_operand.vmem [shape: f32[1,32], index: 4, kind: input, shape index: {}]   ;;  %s338_s5 = inlined_call_operand.hbm [shape: f32[8,32], index: 5, kind: output, shape index: {}]  }
   0x1   :  { %v21_v0 = vld [vmem:[%s333_s0] sm:$0xff]  ;;  %v54_v2 = vld [vmem:[%s336_s3 + $0x8] sm:$0xff]  ;;  %216 = vset.pattern.permute.xlu0 %v246_v3  ;;  %198 = vmatprep.subr.bf16.mxu0 %v247_v4  ;;  %v55_v6 = vld [vmem:[%s336_s3 + $0x10] sm:$0xff] }
   0x2   :  { %v53_v1 = vld [vmem:[%s336_s3] sm:$0xff]  ;;  %v56_v7 = vld [vmem:[%s336_s3 + $0x18] sm:$0xff]  ;;  %25 = vperm.xlu0 %216, %v21_v0  }
   0x3   :  { %v199_v5 = vpack.c.bf16 %v54_v2, %v53_v1 }
   0x4   :  { %10 = vsyncpa [#allocation3], 0  ;;  %v202_v8 = vpack.c.bf16 %v56_v7, %v55_v6  ;;  %v57_v9 = vld [vmem:[%s336_s3 + $0x20] sm:$0xff]  ;;  %v58_v10 = vld [vmem:[%s336_s3 + $0x28] sm:$0xff]  ;;  %v248_v11 = vmov 1   ;;  %vm249_vm0 = vmmov 0  }
   0x5   :  { %200 = vmatpush3.bf16.msra.mxu0 %v199_v5  ;;  %v205_v12 = vpack.c.bf16 %v58_v10, %v57_v9  ;;  %v59_v13 = vld [vmem:[%s336_s3 + $0x30] sm:$0xff]  ;;  %v60_v14 = vld [vmem:[%s336_s3 + $0x38] sm:$0xff]  ;;  %v250_v16 = vmov 0.0   ;;  %v164_v18 = vld [vmem:[%s334_s1] ss:$0 sm:$0xff]  ;;  %vm68_vm1 = vcmask 523264  }
   0x6   :  { %201 = vmatprep.subr.bf16.mxu0 %v247_v4  ;;  %217 = vset.pattern.permute.xlu0 %v248_v11  ;;  %v208_v15 = vpack.c.bf16 %v60_v14, %v59_v13  ;;  %v165_v19 = vld [vmem:[%s334_s1 + $0x1] ss:$0 sm:$0xff]  ;;  %v166_v23 = vld [vmem:[%s335_s2] ss:$0 sm:$0xff]  ;;  %s251_s1 = smov [#allocation2]   ;;  %vm148_vm2 = vcmask 261120  }
   0x7   :  { %35 = vperm.xlu0 %217, %v21_v0   ;;  %195 = vmatprep.mubr.msk.f32.mxu0 %vm249_vm0, %v250_v16  ;;  %v167_v27 = vld [vmem:[%s337_s4] ss:$0 sm:$0xff]  ;;  %s156_s17 = sshll.u32 %s251_s1, 4  ;;  %s157_s17 = int_to_ptr.vmem [resolvable:$true] %s156_s17 }
   0x8   :  { %s222_s2 = scalar_lea.vmem %s157_s17, 128  ;;  %p227_p1 = scmp.lt.s32.totalorder %s157_s17, %s157_s17 }
   0x9   :  { %203 = vmatpush3.bf16.msra.mxu0 %v202_v8  ;;  %p223_p0 = scmp.ne.s32.totalorder %s157_s17, %s222_s2  ;;  %p228_p2 = scmp.lt.s32.totalorder %s222_s2, %s222_s2 }
   0xa   :  { %204 = vmatprep.subr.bf16.mxu0 %v247_v4 }
   0xb   :  { %p229_p3 = por %p228_p2, %p227_p1 }
   0xd   :  { %206 = vmatpush3.bf16.msra.mxu0 %v205_v12  ;;  %p230_p4 = pnand %p229_p3, %p223_p0 }
   0xe   :  { %207 = vmatprep.subr.bf16.mxu0 %v247_v4 }
  0x11   :  { %209 = vmatpush3.bf16.msra.mxu0 %v208_v15 }
  0x81   :  { %v26_v17 = vpop.permute.xlu0 %25 }
  0x82   :  { %v32_v21 = vmul.f32 %v164_v18, %v26_v17 }
  0x86   :  { %v36_v20 = vpop.permute.xlu0 %35 }
  0x87   :  { %v42_v22 = vmul.f32 %v165_v19, %v36_v20 }
  0x89   :  { %v43_v24 = vadd.f32 %v42_v22, %v32_v21 }
  0x8b   :  { %v51_v25 = vadd.f32 %v166_v23, %v43_v24 }
  0x8d   :  { %v52_v26 = vmax.f32 %v51_v25, 0.0 }
  0x8f   :  { %196 = vmatmul.mubr.msk.f32.vlgmr.msra.gmra.mrb[0].mxu0 %vm68_vm1, %v52_v26 }
 0x162   :  { %v138_v28 = vpop.f32.mrb[0].mxu0 }
 0x163   :  { %v139_v29 = vadd.f32 %v167_v27, %v138_v28  ;;  %v197_v30 = vpop.f32.mrb[1].mxu0 }
 0x165   :  { %v169_v31 = vmul.f32 -1.442695, %v139_v29 }
 0x167   :  { %218 = vpow2.f32 %v169_v31 }
 0x171   :  { %v219_v32 = vpop.eup %218 }
 0x172   :  { %v145_v33 = vadd.f32 1.0, %v219_v32 }
 0x174   :  { %220 = vrcp.f32 %v145_v33 }
 0x17e   :  { %v221_v34 = vpop.eup %220 }
 0x17f   :  { %149 = vst.msk [vmem:[#allocation2] sm:$0xff] %vm148_vm2, %v221_v34 }
 0x180   :  { %233 = shalt.err (!%p230_p4)
}
 0x181   :  { %s234_s19 = scalar_lea.hbm %s338_s5, 128 }
 0x182   :  { %p235_p5 = scmp.ne.s32.totalorder %s338_s5, %s234_s19  ;;  %p238_p6 = scmp.lt.u32.totalorder %s234_s19, %s338_s5 }
 0x184   :  { %p240_p7 = pnand %p238_p6, %p235_p5 }
 0x186   :  { %243 = shalt.err (!%p240_p7)
}
 0x187   :  { %159 = dma.vmem_to_hbm [thread:$0]  %s157_s17, 128, %s338_s5, [#allocation3]  }
 0x188   :  { %244 = dma.done.wait [#allocation3], 128  }
 0x189   :  { %245 = vsyncadd [#allocation3], 4294967168 }
 0x18a   :  { %163 = vsyncpa [#allocation3], 1 }

</bundles_post_ra>
